<compile_context>
chip_gen: v7x
topology: tpu7x:2x2x1
jax: 0.10.0
libtpu: 0.0.40
codegen_flags: <defaults>
</compile_context>

<pallas_src>
import numpy as np
import jax
import jax.numpy as jnp
from jax.experimental import pallas as pl
from jax.experimental.pallas import tpu as pltpu


# ----------------------------------------------------------------------------
# Host-side glue: torchvision/PIL antialias-bilinear and edge-pad weight matrices
# (static shapes -> computed at build time in numpy).
# ----------------------------------------------------------------------------
def _aa_bilinear_matrix(in_size: int, out_size: int) -> np.ndarray:
    """PIL/torchvision antialiased bilinear (triangle filter) resize as a
    (out_size, in_size) matrix. Degenerates to standard bilinear on upsample."""
    mat = np.zeros((out_size, in_size), dtype=np.float64)
    scale = in_size / out_size
    filterscale = max(scale, 1.0)
    support = 1.0 * filterscale          # triangle filter support = 1
    inv = 1.0 / filterscale
    for i in range(out_size):
        center = (i + 0.5) * scale
        xmin = max(int(center - support + 0.5), 0)
        xmax = min(int(center + support + 0.5), in_size)
        ws = [max(1.0 - abs((xx - center + 0.5) * inv), 0.0)
              for xx in range(xmin, xmax)]
        total = sum(ws)
        for xx, w in zip(range(xmin, xmax), ws):
            mat[i, xx] = w / total
    return mat


def _edge_pad_matrix(in_size: int, pad: int) -> np.ndarray:
    """'edge' (replicate) padding of `pad` on both sides as a matrix."""
    out_size = in_size + 2 * pad
    mat = np.zeros((out_size, in_size), dtype=np.float64)
    for i in range(out_size):
        mat[i, min(max(i - pad, 0), in_size - 1)] = 1.0
    return mat


def _build_transforms(h_in: int, w_in: int, max_sz: int):
    """Fold resize -> edge-pad -> resize into one H transform and one W transform."""
    # TODO(synk): follows the PIL triangle-filter algorithm; may not bit-match
    # torchvision for borderline rounding of the shorter-edge size / odd offsets.
    w, h = w_in, h_in
    size = int(min(w, h) / (max(w, h) / max_sz))
    # torchvision resize with int size: shorter edge -> size, keep aspect ratio.
    if w <= h:
        w1, h1 = size, int(size * h / w)
    else:
        h1, w1 = size, int(size * w / h)
    r1_h = _aa_bilinear_matrix(h_in, h1)
    r1_w = _aa_bilinear_matrix(w_in, w1)

    offset = (max_sz - min(w1, h1)) // 2
    if h1 < w1:                       # padding = [0, offset] -> pad top/bottom
        pad_h, pad_w = offset, 0
    else:                             # padding = [offset, 0] -> pad left/right
        pad_h, pad_w = 0, offset
    p_h = _edge_pad_matrix(h1, pad_h)
    p_w = _edge_pad_matrix(w1, pad_w)

    r2_h = _aa_bilinear_matrix(h1 + 2 * pad_h, max_sz)
    r2_w = _aa_bilinear_matrix(w1 + 2 * pad_w, max_sz)

    a_h = (r2_h @ p_h @ r1_h).astype(np.float32)   # (max_sz, h_in)
    a_w = (r2_w @ p_w @ r1_w).astype(np.float32)   # (max_sz, w_in)
    return a_h, a_w


def _round_up(v: int, m: int) -> int:
    return (v + m - 1) // m * m


def _vmem_budget_bytes() -> int:
    """Generation-aware VMEM budget: ~80 MiB on v5e/v6e (128 MiB physical),
    ~40 MiB on v7x (64 MiB physical). Leaves headroom for Mosaic scratch."""
    try:
        cap = int(pltpu.get_tpu_info().vmem_capacity_bytes)
    except Exception:
        cap = 64 * 1024 * 1024
    return max(min(cap * 5 // 8, 96 * 1024 * 1024), 16 * 1024 * 1024)


# ----------------------------------------------------------------------------
# Kernel 1 ("kron"): one lane-dense MXU matmul per block of image planes.
#   out_flat[block] = x_flat[block] @ K       (B, H*W) @ (H*W, S*S) -> (B, S*S)
# ----------------------------------------------------------------------------
def _make_kron_kernel(compute_dtype):
    def kernel(k_ref, x_ref, o_ref):
        x = x_ref[...].astype(compute_dtype)          # in-kernel cast: no extra HBM pass
        o_ref[...] = jnp.dot(x, k_ref[...],
                             preferred_element_type=jnp.float32).astype(o_ref.dtype)
    return kernel


# ----------------------------------------------------------------------------
# Kernel 2 ("separable"): two clean MXU matmuls per plane, no transposes.
#   T = X @ A_w^T   (H,W)@(W,S);   out = A_h @ T   (S,H)@(H,S)
# ----------------------------------------------------------------------------
def _make_separable_kernel(block: int, compute_dtype):
    def kernel(a_h_ref, a_wt_ref, x_ref, o_ref):
        a_h = a_h_ref[...]        # (S, H)
        a_wt = a_wt_ref[...]      # (W, S)
        for b in range(block):    # static unroll; block is small (<= 16)
            xp = x_ref[b].astype(compute_dtype)                           # (H, W)
            t = jnp.dot(xp, a_wt, preferred_element_type=jnp.float32)     # (H, S)
            o_ref[b] = jnp.dot(a_h, t.astype(compute_dtype),
                               preferred_element_type=jnp.float32
                               ).astype(o_ref.dtype)                      # (S, S)
    return kernel


def resize_pad(x, max_sz: int = 16, padding_mode: str = "edge",
               compute_dtype=jnp.float32, path: str = "auto"):
    """Pallas equivalent of ResizePad.forward for NCHW float inputs.

    path: "auto" | "kron" | "separable"
    """
    assert padding_mode == "edge", "only padding_mode='edge' is implemented"
    assert path in ("auto", "kron", "separable")
    # TODO(synk): the PyTorch module handles runtime-varying image sizes; here the
    # resize geometry is fixed at trace time (static JAX shapes).
    n, c, h_in, w_in = x.shape
    s = max_sz
    hw, ss = h_in * w_in, s * s
    nc = n * c
    a_h_np, a_w_np = _build_transforms(h_in, w_in, max_sz)

    in_bytes = x.dtype.itemsize                          # x stays in its HBM dtype
    cd_bytes = jnp.dtype(compute_dtype).itemsize
    budget = _vmem_budget_bytes()
    kron_bytes = hw * ss * cd_bytes
    # K has a constant index_map (DMA'd once) but is still allocated double-buffered
    # by default; budget 2x instead of relying on pl.Buffered(1).
    use_kron = (path == "kron") or (path == "auto" and 2 * kron_bytes <= budget // 4)

    compiler_params = pltpu.CompilerParams(
        dimension_semantics=("parallel",),
        vmem_limit_bytes=budget)

    if use_kron:
        # K[h*W + w, o*S + p] = A_h[o, h] * A_w[p, w]  =>  out_flat = x_flat @ K.
        kmat = jnp.asarray(np.kron(a_h_np, a_w_np).T, dtype=compute_dtype)
        # TODO(synk): pad the hw contraction dim / ss lane dim to 128-multiples for
        # non-multiple shapes (modest win; kernel is memory-bound at these sizes).

        sub = max(8, 32 // max(in_bytes, 1))             # sublane granularity of x dtype
        per_plane = 2 * (hw * in_bytes + ss * 4)         # double-buffered in + out blocks
        avail = max(budget - 2 * kron_bytes, per_plane * sub)
        max_blk = max(sub, (avail // per_plane) // sub * sub)
        tgt_blk = max(sub, ((4 * 1024 * 1024) // max(hw * in_bytes, 1)) // sub * sub)
        par_blk = _round_up(pl.cdiv(nc, 4), sub)         # keep >=4 grid steps (v7x: 2 TCs)
        block = max(sub, min(max_blk, tgt_blk, par_blk))
        block = min(block, nc) if nc >= sub else nc      # full-dim block is always legal

        x_flat = x.reshape(nc, hw)                       # free reshape, no pad, no cast
        out = pl.pallas_call(
            _make_kron_kernel(compute_dtype),
            out_shape=jax.ShapeDtypeStruct((nc, ss), jnp.float32),
            grid_spec=pltpu.PrefetchScalarGridSpec(
                num_scalar_prefetch=0,
                grid=(pl.cdiv(nc, block),),
                in_specs=[
                    pl.BlockSpec((hw, ss), lambda b: (0, 0)),      # K: resident
                    pl.BlockSpec((block, hw), lambda b: (b, 0)),   # plane block
                ],
                out_specs=pl.BlockSpec((block, ss), lambda b: (b, 0)),
            ),
            compiler_params=compiler_params,
            cost_estimate=pl.CostEstimate(
                flops=2 * nc * hw * ss,
                transcendentals=0,
                bytes_accessed=nc * hw * in_bytes + nc * ss * 4 + kron_bytes),
        )(kmat, x_flat)
        return out.reshape(n, c, s, s)

    # ----- separable path -----
    a_h = jnp.asarray(a_h_np, dtype=compute_dtype)                 # (S, H)
    a_wt = jnp.asarray(np.ascontiguousarray(a_w_np.T), dtype=compute_dtype)  # (W, S)

    wbytes = 2 * (s * h_in + w_in * s) * cd_bytes                  # weights, double-buffered
    per_plane = 2 * hw * in_bytes + 2 * ss * 4 + (h_in * s + ss) * 4
    if per_plane + wbytes > budget:
        # TODO(synk): extremely large planes need H/W tiling inside the kernel;
        # plain XLA fallback for now.
        return jnp.einsum("oh,nchw,pw->ncop",
                          jnp.asarray(a_h_np), x.astype(jnp.float32),
                          jnp.asarray(a_w_np))

    block = max(1, min(16,                                          # unroll cap
                       (2 * 1024 * 1024) // max(hw * in_bytes, 1), # ~2 MiB input / step
                       (budget - wbytes) // per_plane,
                       pl.cdiv(nc, 2),                             # >=2 grid steps (v7x)
                       nc))

    x3 = x.reshape(nc, h_in, w_in)                                 # free reshape
    out = pl.pallas_call(
        _make_separable_kernel(block, compute_dtype),
        out_shape=jax.ShapeDtypeStruct((nc, s, s), jnp.float32),
        grid_spec=pltpu.PrefetchScalarGridSpec(
            num_scalar_prefetch=0,
            grid=(pl.cdiv(nc, block),),
            in_specs=[
                pl.BlockSpec((s, h_in), lambda b: (0, 0)),           # A_h   (resident)
                pl.BlockSpec((w_in, s), lambda b: (0, 0)),           # A_w^T (resident)
                pl.BlockSpec((block, h_in, w_in), lambda b: (b, 0, 0)),
            ],
            out_specs=pl.BlockSpec((block, s, s), lambda b: (b, 0, 0)),
        ),
        compiler_params=compiler_params,
        cost_estimate=pl.CostEstimate(
            flops=2 * nc * s * (hw + h_in * s),
            transcendentals=0,
            bytes_accessed=nc * hw * in_bytes + nc * ss * 4
                           + (s * h_in + w_in * s) * cd_bytes),
    )(a_h, a_wt, x3)
    return out.reshape(n, c, s, s)


if __name__ == "__main__":
    key = jax.random.PRNGKey(0)
    N, C, H, W = 2, 4, 12, 20          # non-square image to exercise resize+pad logic
    MAX_SZ = 16
    x = jax.random.uniform(key, (N, C, H, W), dtype=jnp.float32)

    # Pure-JAX reference of the same folded linear transform.
    a_h_np, a_w_np = _build_transforms(H, W, MAX_SZ)
    ref = jnp.einsum("oh,nchw,pw->ncop",
                     jnp.asarray(a_h_np), x.astype(jnp.float32),
                     jnp.asarray(a_w_np))

    # 1) kron fast path (auto-selected at this size), f32.
    y = jax.block_until_ready(resize_pad(x, max_sz=MAX_SZ, padding_mode="edge"))
    assert y.shape == (N, C, MAX_SZ, MAX_SZ)
    assert y.dtype == jnp.float32
    np.testing.assert_allclose(np.asarray(y), np.asarray(ref), rtol=1e-4, atol=1e-4)

    # 2) separable path (forced) — the path real image sizes (e.g. max_sz=256) take.
    y_sep = jax.block_until_ready(
        resize_pad(x, max_sz=MAX_SZ, path="separable"))
    np.testing.assert_allclose(np.asarray(y_sep), np.asarray(ref), rtol=1e-4, atol=1e-4)

    # 3) bf16-operand / f32-accumulation path (in-kernel cast; x stays f32 in HBM).
    y_bf16 = jax.block_until_ready(
        resize_pad(x, max_sz=MAX_SZ, compute_dtype=jnp.bfloat16))
    np.testing.assert_allclose(np.asarray(y_bf16), np.asarray(ref), rtol=2e-2, atol=2e-2)

    print("KERNEL_OK")
</pallas_src>

<mosaic_0001>
module attributes {stable_mosaic.version = 11 : i64} {
  func.func @kernel(%arg0: i32, %arg1: memref<240x256xf32, #tpu.memory_space<vmem>>, %arg2: memref<8x240xf32, #tpu.memory_space<vmem>>, %arg3: memref<8x256xf32, #tpu.memory_space<vmem>>) attributes {dimension_semantics = [#tpu.dimension_semantics<parallel>], iteration_bounds = array<i64: 1>, scalar_prefetch = 0 : i64, scratch_operands = 0 : i64, tpu.core_type = #tpu.core_type<tc>, window_params = [{pipeline_mode = #tpu.pipeline_mode<synchronous>, transform_indices = @transform_0, window_bounds = array<i64: 240, 256>}, {transform_indices = @transform_1, window_bounds = array<i64: 8, 240>}, {transform_indices = @transform_2, window_bounds = array<i64: 8, 256>}]} {
    %c0 = arith.constant 0 : index
    %c0_0 = arith.constant 0 : index
    %0 = vector.load %arg2[%c0, %c0_0] : memref<8x240xf32, #tpu.memory_space<vmem>>, vector<8x240xf32>
    %c0_1 = arith.constant 0 : index
    %c0_2 = arith.constant 0 : index
    %1 = vector.load %arg1[%c0_1, %c0_2] : memref<240x256xf32, #tpu.memory_space<vmem>>, vector<240x256xf32>
    %cst = arith.constant dense<0.000000e+00> : vector<8x256xf32>
    %2 = tpu.matmul %0, %1, %cst {dimension_numbers = #tpu.dot_dimension_numbers<[1], [0], [0], [1], [0, 0, 1, 1], [], []>} : vector<8x240xf32>, vector<240x256xf32>, vector<8x256xf32> -> vector<8x256xf32>
    %c0_3 = arith.constant 0 : index
    %c0_4 = arith.constant 0 : index
    %3 = vector.load %arg3[%c0_3, %c0_4] : memref<8x256xf32, #tpu.memory_space<vmem>>, vector<8x256xf32>
    tpu.vector_store %arg3[%c0_3, %c0_4], %2 {strides = array<i32>} : memref<8x256xf32, #tpu.memory_space<vmem>>, vector<8x256xf32>,
    return
  }
  func.func @transform_0(%arg0: i32) -> (i32, i32) {
    %c0_i32 = arith.constant 0 : i32
    %c0_i32_0 = arith.constant 0 : i32
    %c0_i32_1 = arith.constant 0 : i32
    return %c0_i32, %c0_i32_0 : i32, i32
  }
  func.func @transform_1(%arg0: i32) -> (i32, i32) {
    %c0_i32 = arith.constant 0 : i32
    %c0_i32_0 = arith.constant 0 : i32
    return %arg0, %c0_i32 : i32, i32
  }
  func.func @transform_2(%arg0: i32) -> (i32, i32) {
    %c0_i32 = arith.constant 0 : i32
    %c0_i32_0 = arith.constant 0 : i32
    return %arg0, %c0_i32 : i32, i32
  }
}

</mosaic_0001>

<bundles_post_ra>
// kernel: tpu_custom_call.1
= control target key start
LH: loop header
LB: loop body
LE: loop exit
PB: predicated region body
PF: predicated region fallthrough
CT: control target
= control target key end

     0   :  { %7 = vsyncpa [#allocation3], 0  ;;  %s387_s0 = inlined_call_operand.hbm [shape: f32[240,256], index: 0, kind: input, shape index: {}]   ;;  %s388_s1 = inlined_call_operand.hbm [shape: f32[8,240], index: 1, kind: input, shape index: {}]   ;;  %s389_s2 = inlined_call_operand.hbm [shape: f32[8,256], index: 2, kind: output, shape index: {}]  }
   0x1   :  { %8 = vsyncpa [#allocation6], 0 }
   0x2   :  { %9 = vsyncpa [#allocation4], 0  ;;  %s331_s9 = smov [#allocation2]   ;;  %s259_s13 = scalar_lea.hbm %s387_s0, 7680 }
   0x3   :  { %s15_s10 = sshll.u32 %s331_s9, 4  ;;  %p260_p0 = scmp.ne.s32.totalorder %s387_s0, %s259_s13  ;;  %s16_s10 = int_to_ptr.vmem [resolvable:$true] %s15_s10 }
   0x4   :  { %p263_p1 = scmp.lt.u32.totalorder %s259_s13, %s387_s0 }
   0x6   :  { %p265_p2 = pnand %p263_p1, %p260_p0 }
   0x8   :  { %268 = shalt.err (!%p265_p2)
}
   0x9   :  { %s269_s18 = scalar_lea.vmem %s16_s10, 7680  ;;  %p274_p4 = scmp.lt.s32.totalorder %s16_s10, %s16_s10 }
   0xa   :  { %p270_p3 = scmp.ne.s32.totalorder %s16_s10, %s269_s18  ;;  %p275_p5 = scmp.lt.s32.totalorder %s269_s18, %s269_s18 }
   0xc   :  { %p276_p6 = por %p275_p5, %p274_p4 }
   0xe   :  { %p277_p7 = pnand %p276_p6, %p270_p3 }
  0x10   :  { %280 = shalt.err (!%p277_p7)
}
  0x11   :  { %s332_s19 = smov 256   ;;  %s333_s20 = smov 16  }
  0x12   :  { %21 = dma.hbm_to_vmem [thread:$0]  %s387_s0, 7680, %s16_s10, [#allocation3], %s332_s19, %s332_s19, %s333_s20  }
  0x13   :  { %s334_s23 = smov [#allocation5]   ;;  %s281_s27 = scalar_lea.hbm %s388_s1, 256 }
  0x14   :  { %s28_s24 = sshll.u32 %s334_s23, 4  ;;  %p282_p8 = scmp.ne.s32.totalorder %s388_s1, %s281_s27  ;;  %s29_s24 = int_to_ptr.vmem [resolvable:$true] %s28_s24 }
  0x15   :  { %p285_p9 = scmp.lt.u32.totalorder %s281_s27, %s388_s1 }
  0x17   :  { %p287_p10 = pnand %p285_p9, %p282_p8 }
  0x19   :  { %290 = shalt.err (!%p287_p10)
}
  0x1a   :  { %s291_s4 = scalar_lea.vmem %s29_s24, 256  ;;  %p296_p12 = scmp.lt.s32.totalorder %s29_s24, %s29_s24 }
  0x1b   :  { %p292_p11 = scmp.ne.s32.totalorder %s29_s24, %s291_s4  ;;  %p297_p13 = scmp.lt.s32.totalorder %s291_s4, %s291_s4 }
  0x1d   :  { %p298_p0 = por %p297_p13, %p296_p12 }
  0x1f   :  { %p299_p1 = pnand %p298_p0, %p292_p11 }
  0x21   :  { %302 = shalt.err (!%p299_p1)
}
  0x22   :  { %31 = dma.hbm_to_vmem [thread:$0]  %s388_s1, 256, %s29_s24, [#allocation6]  }
  0x23   :  { %325 = dma.done.wait [#allocation3], 7680  }
  0x24   :  { %326 = vsyncadd [#allocation3], 4294959616 }
  0x25   :  { %327 = dma.done.wait [#allocation6], 256  }
  0x26   :  { %328 = vsyncadd [#allocation6], 4294967040  ;;  %v41_v0 = vld [vmem:[#allocation2 + $0x8] sm:$0xff]  ;;  %v43_v1 = vld [vmem:[#allocation2 + $0x18] sm:$0xff]  ;;  %vm100_vm0 = vcmask 916480   ;;  %s335_s1 = smov [#allocation7]  }
  0x27   :  { %v40_v2 = vld [vmem:[#allocation2] sm:$0xff]  ;;  %v194_v3 = vpack.c.bf16 %v43_v1, %v41_v0  ;;  %v42_v4 = vld [vmem:[#allocation2 + $0x10] sm:$0xff]  ;;  %v45_v5 = vld [vmem:[#allocation2 + $0x28] sm:$0xff]  ;;  %s183_s6 = sshll.u32 %s335_s1, 4  ;;  %s184_s6 = int_to_ptr.vmem [resolvable:$true] %s183_s6 }
  0x28   :  { %v47_v6 = vld [vmem:[#allocation2 + $0x38] sm:$0xff]  ;;  %v196_v7 = vpack.c.bf16 %v42_v4, %v40_v2  ;;  %v44_v9 = vld [vmem:[#allocation2 + $0x20] sm:$0xff]  ;;  %v46_v10 = vld [vmem:[#allocation2 + $0x30] sm:$0xff]  ;;  %s303_s7 = scalar_lea.vmem %s184_s6, 256  ;;  %p308_p3 = scmp.lt.s32.totalorder %s184_s6, %s184_s6 }
  0x29   :  { %v198_v8 = vpack.c.bf16 %v47_v6, %v45_v5  ;;  %v49_v11 = vld [vmem:[#allocation2 + $0x48] sm:$0xff]  ;;  %195 = vmatprep.subr.bf16.mxu0 %v194_v3  ;;  %v51_v12 = vld [vmem:[#allocation2 + $0x58] sm:$0xff]  ;;  %v200_v13 = vpack.c.bf16 %v46_v10, %v44_v9  ;;  %v48_v15 = vld [vmem:[#allocation2 + $0x40] sm:$0xff]  ;;  %p304_p2 = scmp.ne.s32.totalorder %s184_s6, %s303_s7  ;;  %p309_p4 = scmp.lt.s32.totalorder %s303_s7, %s303_s7 }
  0x2a   :  { %197 = vmatpush1.bf16.msra.mxu0 %v196_v7  ;;  %v202_v14 = vpack.c.bf16 %v51_v12, %v49_v11  ;;  %v50_v16 = vld [vmem:[#allocation2 + $0x50] sm:$0xff]  ;;  %v53_v17 = vld [vmem:[#allocation2 + $0x68] sm:$0xff]  ;;  %v55_v18 = vld [vmem:[#allocation2 + $0x78] sm:$0xff] }
  0x2b   :  { %199 = vmatprep.subr.bf16.mxu0 %v198_v8  ;;  %v204_v19 = vpack.c.bf16 %v50_v16, %v48_v15  ;;  %v206_v20 = vpack.c.bf16 %v55_v18, %v53_v17  ;;  %v52_v21 = vld [vmem:[#allocation2 + $0x60] sm:$0xff]  ;;  %v54_v22 = vld [vmem:[#allocation2 + $0x70] sm:$0xff]  ;;  %v57_v23 = vld [vmem:[#allocation2 + $0x88] sm:$0xff]  ;;  %p310_p5 = por %p309_p4, %p308_p3 }
  0x2c   :  { %v59_v24 = vld [vmem:[#allocation2 + $0x98] sm:$0xff]  ;;  %v208_v25 = vpack.c.bf16 %v54_v22, %v52_v21  ;;  %v56_v27 = vld [vmem:[#allocation2 + $0x80] sm:$0xff]  ;;  %v58_v28 = vld [vmem:[#allocation2 + $0x90] sm:$0xff] }
  0x2d   :  { %v210_v26 = vpack.c.bf16 %v59_v24, %v57_v23  ;;  %v61_v29 = vld [vmem:[#allocation2 + $0xa8] sm:$0xff]  ;;  %v63_v30 = vld [vmem:[#allocation2 + $0xb8] sm:$0xff]  ;;  %v212_v31 = vpack.c.bf16 %v58_v28, %v56_v27  ;;  %v60_v33 = vld [vmem:[#allocation2 + $0xa0] sm:$0xff]  ;;  %p311_p6 = pnand %p310_p5, %p304_p2 }
  0x2e   :  { %201 = vmatpush1.bf16.msra.mxu0 %v200_v13  ;;  %v214_v32 = vpack.c.bf16 %v63_v30, %v61_v29  ;;  %v62_v34 = vld [vmem:[#allocation2 + $0xb0] sm:$0xff]  ;;  %v65_v35 = vld [vmem:[#allocation2 + $0xc8] sm:$0xff]  ;;  %v67_v36 = vld [vmem:[#allocation2 + $0xd8] sm:$0xff] }
  0x2f   :  { %203 = vmatprep.subr.bf16.mxu0 %v202_v14  ;;  %v216_v37 = vpack.c.bf16 %v62_v34, %v60_v33  ;;  %v39_v38 = vld [vmem:[#allocation5 + $0x8] sm:$0xff]  ;;  %v218_v39 = vpack.c.bf16 %v67_v36, %v65_v35  ;;  %v64_v40 = vld [vmem:[#allocation2 + $0xc0] sm:$0xff]  ;;  %v66_v41 = vld [vmem:[#allocation2 + $0xd0] sm:$0xff] }
  0x30   :  { %193 = vmatprep.mubr.msk.f32.mxu0 %vm100_vm0, %v39_v38  ;;  %v69_v42 = vld [vmem:[#allocation2 + $0xe8] sm:$0xff]  ;;  %v71_v43 = vld [vmem:[#allocation2 + $0xf8] sm:$0xff]  ;;  %v220_v44 = vpack.c.bf16 %v66_v41, %v64_v40  ;;  %v68_v46 = vld [vmem:[#allocation2 + $0xe0] sm:$0xff] }
  0x31   :  { %v222_v45 = vpack.c.bf16 %v71_v43, %v69_v42  ;;  %v70_v47 = vld [vmem:[#allocation2 + $0xf0] sm:$0xff]  ;;  %v73_v48 = vld [vmem:[#allocation2 + $0x108] sm:$0xff]  ;;  %v75_v49 = vld [vmem:[#allocation2 + $0x118] sm:$0xff] }
  0x32   :  { %205 = vmatpush1.bf16.msra.mxu0 %v204_v19  ;;  %v224_v50 = vpack.c.bf16 %v70_v47, %v68_v46  ;;  %v226_v51 = vpack.c.bf16 %v75_v49, %v73_v48  ;;  %v72_v52 = vld [vmem:[#allocation2 + $0x100] sm:$0xff]  ;;  %v74_v53 = vld [vmem:[#allocation2 + $0x110] sm:$0xff]  ;;  %v77_v54 = vld [vmem:[#allocation2 + $0x128] sm:$0xff] }
  0x33   :  { %207 = vmatprep.subr.bf16.mxu0 %v206_v20  ;;  %v79_v55 = vld [vmem:[#allocation2 + $0x138] sm:$0xff]  ;;  %v228_v56 = vpack.c.bf16 %v74_v53, %v72_v52  ;;  %v76_v58 = vld [vmem:[#allocation2 + $0x120] sm:$0xff]  ;;  %v78_v59 = vld [vmem:[#allocation2 + $0x130] sm:$0xff] }
  0x34   :  { %v230_v57 = vpack.c.bf16 %v79_v55, %v77_v54  ;;  %v81_v60 = vld [vmem:[#allocation2 + $0x148] sm:$0xff]  ;;  %v83_v61 = vld [vmem:[#allocation2 + $0x158] sm:$0xff]  ;;  %v232_v62 = vpack.c.bf16 %v78_v59, %v76_v58  ;;  %v80_v0 = vld [vmem:[#allocation2 + $0x140] sm:$0xff] }
  0x35   :  { %v234_v63 = vpack.c.bf16 %v83_v61, %v81_v60  ;;  %v82_v1 = vld [vmem:[#allocation2 + $0x150] sm:$0xff]  ;;  %v85_v2 = vld [vmem:[#allocation2 + $0x168] sm:$0xff]  ;;  %v87_v3 = vld [vmem:[#allocation2 + $0x178] sm:$0xff] }
  0x36   :  { %209 = vmatpush1.bf16.msra.mxu0 %v208_v25  ;;  %v236_v4 = vpack.c.bf16 %v82_v1, %v80_v0  ;;  %v238_v5 = vpack.c.bf16 %v87_v3, %v85_v2  ;;  %v84_v6 = vld [vmem:[#allocation2 + $0x160] sm:$0xff]  ;;  %v86_v7 = vld [vmem:[#allocation2 + $0x170] sm:$0xff]  ;;  %v89_v8 = vld [vmem:[#allocation2 + $0x188] sm:$0xff] }
  0x37   :  { %211 = vmatprep.subr.bf16.mxu0 %v210_v26  ;;  %v91_v9 = vld [vmem:[#allocation2 + $0x198] sm:$0xff]  ;;  %v240_v10 = vpack.c.bf16 %v86_v7, %v84_v6  ;;  %v88_v12 = vld [vmem:[#allocation2 + $0x180] sm:$0xff]  ;;  %v90_v13 = vld [vmem:[#allocation2 + $0x190] sm:$0xff] }
  0x38   :  { %v242_v11 = vpack.c.bf16 %v91_v9, %v89_v8  ;;  %v93_v14 = vld [vmem:[#allocation2 + $0x1a8] sm:$0xff]  ;;  %v95_v15 = vld [vmem:[#allocation2 + $0x1b8] sm:$0xff]  ;;  %v244_v16 = vpack.c.bf16 %v90_v13, %v88_v12  ;;  %v92_v18 = vld [vmem:[#allocation2 + $0x1a0] sm:$0xff] }
  0x39   :  { %v246_v17 = vpack.c.bf16 %v95_v15, %v93_v14  ;;  %v94_v19 = vld [vmem:[#allocation2 + $0x1b0] sm:$0xff]  ;;  %v97_v20 = vld [vmem:[#allocation2 + $0x1c8] sm:$0xff]  ;;  %v99_v21 = vld [vmem:[#allocation2 + $0x1d8] sm:$0xff] }
  0x3a   :  { %213 = vmatpush1.bf16.msra.mxu0 %v212_v31  ;;  %v248_v22 = vpack.c.bf16 %v94_v19, %v92_v18  ;;  %v250_v23 = vpack.c.bf16 %v99_v21, %v97_v20  ;;  %v96_v24 = vld [vmem:[#allocation2 + $0x1c0] sm:$0xff]  ;;  %v98_v25 = vld [vmem:[#allocation2 + $0x1d0] sm:$0xff] }
  0x3b   :  { %215 = vmatprep.subr.bf16.mxu0 %v214_v32  ;;  %v252_v26 = vpack.c.bf16 %v98_v25, %v96_v24  ;;  %v38_v27 = vld [vmem:[#allocation5] sm:$0xff] }
  0x3e   :  { %217 = vmatpush1.bf16.msra.mxu0 %v216_v37 }
  0x3f   :  { %219 = vmatprep.subr.bf16.mxu0 %v218_v39 }
  0x42   :  { %221 = vmatpush1.bf16.msra.mxu0 %v220_v44 }
  0x43   :  { %223 = vmatprep.subr.bf16.mxu0 %v222_v45 }
  0x46   :  { %225 = vmatpush1.bf16.msra.mxu0 %v224_v50 }
  0x47   :  { %227 = vmatprep.subr.bf16.mxu0 %v226_v51 }
  0x4a   :  { %229 = vmatpush1.bf16.msra.mxu0 %v228_v56 }
  0x4b   :  { %231 = vmatprep.subr.bf16.mxu0 %v230_v57 }
  0x4e   :  { %233 = vmatpush1.bf16.msra.mxu0 %v232_v62 }
  0x4f   :  { %235 = vmatprep.subr.bf16.mxu0 %v234_v63 }
  0x52   :  { %237 = vmatpush1.bf16.msra.mxu0 %v236_v4 }
  0x53   :  { %239 = vmatprep.subr.bf16.mxu0 %v238_v5 }
  0x56   :  { %241 = vmatpush1.bf16.msra.mxu0 %v240_v10 }
  0x57   :  { %243 = vmatprep.subr.bf16.mxu0 %v242_v11 }
  0x5a   :  { %245 = vmatpush1.bf16.msra.mxu0 %v244_v16 }
  0x5b   :  { %247 = vmatprep.subr.bf16.mxu0 %v246_v17 }
  0x5e   :  { %249 = vmatpush1.bf16.msra.mxu0 %v248_v22 }
  0x5f   :  { %251 = vmatprep.subr.bf16.mxu0 %v250_v23 }
  0x62   :  { %253 = vmatpush1.bf16.msra.mxu0 %v252_v26 }
  0x65   :  { %169 = vmatmul.mubr.f32.vlgmr.msra.gmra.mrb[0].mxu0 %v38_v27 }
 0x138   :  { %v170_v28 = vpop.f32.mrb[0].mxu0 }
 0x139   :  { %175 = vst [vmem:[#allocation7] sm:$0xff] %v170_v28  ;;  %v172_v29 = vpop.f32.mrb[1].mxu0 }
 0x13a   :  { %176 = vst [vmem:[#allocation7 + $0x8] sm:$0xff] %v172_v29 }
 0x13b   :  { %314 = shalt.err (!%p311_p6)
}
 0x13c   :  { %s315_s10 = scalar_lea.hbm %s389_s2, 256 }
 0x13d   :  { %p316_p7 = scmp.ne.s32.totalorder %s389_s2, %s315_s10  ;;  %p319_p8 = scmp.lt.u32.totalorder %s315_s10, %s389_s2 }
 0x13f   :  { %p321_p9 = pnand %p319_p8, %p316_p7 }
 0x141   :  { %324 = shalt.err (!%p321_p9)
}
 0x142   :  { %186 = dma.vmem_to_hbm [thread:$0]  %s184_s6, 256, %s389_s2, [#allocation4]  }
 0x143   :  { %329 = dma.done.wait [#allocation4], 256  }
 0x144   :  { %330 = vsyncadd [#allocation4], 4294967040 }
 0x145   :  { %190 = vsyncpa [#allocation3], 1 }
 0x146   :  { %191 = vsyncpa [#allocation6], 1 }
 0x147   :  { %192 = vsyncpa [#allocation4], 1 }

</bundles_post_ra>
